<compile_context>
chip_gen: v7x
topology: tpu7x:2x2x1
jax: 0.10.0
libtpu: 0.0.40
codegen_flags: <defaults>
</compile_context>

<pallas_src>
import functools

import jax
import jax.numpy as jnp
from jax.experimental import pallas as pl
from jax.experimental.pallas import tpu as pltpu

NEG_SLOPE = 0.01   # torch.nn.LeakyReLU default negative_slope
N_LAYERS = 10      # 10 Linear layers; LeakyReLU after the first 9
F_PAD = 128        # lane width; packed feature dimension


def _mlp_kernel(x_ref, w_ref, b_ref, o_ref):
    """Fused MLP forward on one packed batch tile.

    x_ref: (tb, 128) bf16        -- G batch rows packed per 128-lane row
    w_ref: (10, 128, 128) bf16   -- block-diagonal packed weights, VMEM-resident
    b_ref: (10, 1, 128) f32      -- tiled biases, VMEM-resident
    o_ref: (tb, 128) f32
    """
    h = x_ref[...]                                           # bf16 (tb, 128)
    for i in range(N_LAYERS):
        # bf16 x bf16 MXU matmul with f32 accumulation; pointwise chain in f32.
        z = jnp.dot(h, w_ref[i], preferred_element_type=jnp.float32) + b_ref[i]
        if i < N_LAYERS - 1:
            z = jnp.maximum(z, NEG_SLOPE * z)                # LeakyReLU (exact, slope<1)
            h = z.astype(jnp.bfloat16)                       # back to bf16 for next MXU pass
        else:
            h = z
    o_ref[...] = h.astype(o_ref.dtype)


@functools.partial(jax.jit, static_argnames=("out_size", "group_width", "tb"))
def dnn_model9_forward(x, w_packed, b_packed, *, out_size, group_width, tb=1024):
    """x: (B, in_features); w_packed: (10,128,128) bf16; b_packed: (10,1,128) f32."""
    B, in_f = x.shape
    gw = int(group_width)
    G = F_PAD // gw                      # batch rows packed per 128-lane row

    # Packed-row count and batch tile.  Cap the tile near half the work so the
    # "parallel" grid has >=2 steps (keeps both v7x TensorCores busy); round to
    # the 8-sublane granule.
    b_pack = pl.cdiv(B, G)
    half = max(8, pl.cdiv(pl.cdiv(b_pack, 2), 8) * 8)
    tb_eff = max(8, min(int(tb), half))
    tb_eff = pl.cdiv(tb_eff, 8) * 8
    b_pad = pl.cdiv(b_pack, tb_eff) * tb_eff         # packed rows after padding
    rows_total = b_pad * G                           # real batch rows after padding

    # Fusible pad (no zeros+scatter buffer): pad batch rows and per-group feature
    # width, then fold G consecutive rows into the 128 lanes.
    x_p = jnp.pad(x.astype(jnp.bfloat16), ((0, rows_total - B), (0, gw - in_f)))
    x_p = x_p.reshape(b_pad, G * gw)                 # (b_pad, 128) lane-dense

    cost = pl.CostEstimate(
        flops=2 * b_pad * N_LAYERS * F_PAD * F_PAD,
        transcendentals=0,
        bytes_accessed=(2 * b_pad * F_PAD                 # bf16 activations in
                        + 4 * b_pad * F_PAD               # f32 out
                        + 2 * N_LAYERS * F_PAD * F_PAD    # bf16 weights
                        + 4 * N_LAYERS * F_PAD),          # f32 biases
    )

    out_p = pl.pallas_call(
        _mlp_kernel,
        out_shape=jax.ShapeDtypeStruct((b_pad, F_PAD), jnp.float32),
        grid=(b_pad // tb_eff,),
        in_specs=[
            pl.BlockSpec((tb_eff, F_PAD), lambda i: (i, 0)),               # x tile
            pl.BlockSpec((N_LAYERS, F_PAD, F_PAD), lambda i: (0, 0, 0)),   # resident W
            pl.BlockSpec((N_LAYERS, 1, F_PAD), lambda i: (0, 0, 0)),       # resident b
        ],
        out_specs=pl.BlockSpec((tb_eff, F_PAD), lambda i: (i, 0)),
        compiler_params=pltpu.CompilerParams(dimension_semantics=("parallel",)),
        cost_estimate=cost,
    )(x_p, w_packed, b_packed)

    # Unpack the G batch rows held in each 128-lane output row.
    out = out_p.reshape(b_pad, G, gw)[:, :, :out_size].reshape(b_pad * G, out_size)
    return out[:B]


def init_params(key, sizes):
    """Deterministic init mimicking nn.Linear's uniform(-1/sqrt(fan_in), +)."""
    weights, biases = [], []
    for i in range(N_LAYERS):
        fan_in, fan_out = sizes[i], sizes[i + 1]
        key, kw, kb = jax.random.split(key, 3)
        bound = 1.0 / float(fan_in) ** 0.5
        # Stored already transposed: (in_features, out_features).
        w = jax.random.uniform(kw, (fan_in, fan_out), jnp.float32, -bound, bound)
        b = jax.random.uniform(kb, (1, fan_out), jnp.float32, -bound, bound)
        weights.append(w)
        biases.append(b)
    return weights, biases


def pack_params(weights, biases):
    """Block-diagonal lane packing.

    Returns (w_packed bf16 (10,128,128), b_packed f32 (10,1,128), group_width).
    Each layer's real (fi, fo) weight is replicated G = 128//group_width times
    along the diagonal so G independent batch rows ride in one 128-lane row.
    """
    max_dim = max(max(w.shape) for w in weights)
    gw = max(8, int(pl.next_power_of_2(max_dim)))
    assert gw <= F_PAD, "feature dims > 128 would need K/N tiling"  # TODO(synk): K/N tiling for wide layers
    G = F_PAD // gw

    w_p = jnp.zeros((N_LAYERS, F_PAD, F_PAD), jnp.float32)
    b_p = jnp.zeros((N_LAYERS, 1, F_PAD), jnp.float32)
    for i in range(N_LAYERS):
        fi, fo = weights[i].shape
        bvec = jnp.reshape(biases[i], (-1,)).astype(jnp.float32)
        for g in range(G):
            w_p = w_p.at[i, g * gw:g * gw + fi, g * gw:g * gw + fo].set(
                weights[i].astype(jnp.float32))
            b_p = b_p.at[i, 0, g * gw:g * gw + fo].set(bvec)
    return w_p.astype(jnp.bfloat16), b_p, gw


if __name__ == "__main__":
    # Shapes consistent with the constructor:
    # input_size=16, hidden_size1..9=32, out_size=8, batch=8.
    batch = 8
    sizes = [16] + [32] * 9 + [8]

    key = jax.random.PRNGKey(0)
    key, kx = jax.random.split(key)
    x = jax.random.normal(kx, (batch, sizes[0]), dtype=jnp.float32)

    weights, biases = init_params(key, sizes)
    w_packed, b_packed, gw = pack_params(weights, biases)

    out = dnn_model9_forward(x, w_packed, b_packed,
                             out_size=sizes[-1], group_width=gw)
    out = jax.block_until_ready(out)

    def ref_forward(xr, mimic_bf16):
        """Pure-JAX reference; mimic_bf16=True mirrors the kernel's bf16 MXU feed."""
        h = xr.astype(jnp.float32)
        for i in range(N_LAYERS):
            if mimic_bf16:
                z = jnp.dot(h.astype(jnp.bfloat16),
                            weights[i].astype(jnp.bfloat16),
                            preferred_element_type=jnp.float32) + biases[i]
            else:
                z = h @ weights[i] + biases[i]
            if i < N_LAYERS - 1:
                z = jnp.where(z >= 0, z, NEG_SLOPE * z)
            h = z
        return h

    assert out.shape == (batch, sizes[-1])
    # Tight check vs. a reference applying the same bf16 operand rounding.
    assert jnp.allclose(out, ref_forward(x, True), atol=2e-3, rtol=2e-3)
    # Loose check vs. exact f32 module semantics (only expected bf16 drift).
    assert jnp.allclose(out, ref_forward(x, False), atol=1e-1, rtol=1e-1)

    # Second check: ragged batch exercising a multi-step "parallel" grid.
    key, kx2 = jax.random.split(key)
    x2 = jax.random.normal(kx2, (40, sizes[0]), dtype=jnp.float32)
    out2 = jax.block_until_ready(
        dnn_model9_forward(x2, w_packed, b_packed,
                           out_size=sizes[-1], group_width=gw, tb=16))
    assert out2.shape == (40, sizes[-1])
    assert jnp.allclose(out2, ref_forward(x2, True), atol=2e-3, rtol=2e-3)

    print("KERNEL_OK")
</pallas_src>

<mosaic_0001>
module attributes {stable_mosaic.version = 11 : i64} {
  func.func @_mlp_kernel(%arg0: i32, %arg1: memref<8x128xbf16, #tpu.memory_space<vmem>>, %arg2: memref<10x128x128xbf16, #tpu.memory_space<vmem>>, %arg3: memref<10x1x128xf32, #tpu.memory_space<vmem>>, %arg4: memref<8x128xf32, #tpu.memory_space<vmem>>) attributes {dimension_semantics = [#tpu.dimension_semantics<parallel>], iteration_bounds = array<i64: 1>, scalar_prefetch = 0 : i64, scratch_operands = 0 : i64, tpu.core_type = #tpu.core_type<tc>, window_params = [{transform_indices = @transform_0, window_bounds = array<i64: 8, 128>}, {pipeline_mode = #tpu.pipeline_mode<synchronous>, transform_indices = @transform_1, window_bounds = array<i64: 10, 128, 128>}, {pipeline_mode = #tpu.pipeline_mode<synchronous>, transform_indices = @transform_2, window_bounds = array<i64: 10, 1, 128>}, {transform_indices = @transform_3, window_bounds = array<i64: 8, 128>}]} {
    %c0 = arith.constant 0 : index
    %c0_0 = arith.constant 0 : index
    %0 = vector.load %arg1[%c0, %c0_0] : memref<8x128xbf16, #tpu.memory_space<vmem>>, vector<8x128xbf16>
    %c0_1 = arith.constant 0 : index
    %c0_2 = arith.constant 0 : index
    %c0_3 = arith.constant 0 : index
    %1 = vector.load %arg2[%c0_1, %c0_2, %c0_3] : memref<10x128x128xbf16, #tpu.memory_space<vmem>>, vector<1x128x128xbf16>
    %2 = vector.shape_cast %1 : vector<1x128x128xbf16> to vector<128x128xbf16>
    %cst = arith.constant dense<0.000000e+00> : vector<8x128xf32>
    %3 = tpu.matmul %0, %2, %cst {dimension_numbers = #tpu.dot_dimension_numbers<[1], [0], [0], [1], [0, 0, 1, 1], [], []>} : vector<8x128xbf16>, vector<128x128xbf16>, vector<8x128xf32> -> vector<8x128xf32>
    %c0_4 = arith.constant 0 : index
    %c0_5 = arith.constant 0 : index
    %c0_6 = arith.constant 0 : index
    %4 = vector.load %arg3[%c0_4, %c0_5, %c0_6] : memref<10x1x128xf32, #tpu.memory_space<vmem>>, vector<1x1x128xf32>
    %5 = vector.shape_cast %4 : vector<1x1x128xf32> to vector<1x128xf32>
    %6 = vector.broadcast %5 : vector<1x128xf32> to vector<8x128xf32>
    %7 = arith.addf %3, %6 : vector<8x128xf32>
    %cst_7 = arith.constant 0.00999999977 : f32
    %8 = vector.broadcast %cst_7 : f32 to vector<8x128xf32>
    %9 = arith.mulf %8, %7 : vector<8x128xf32>
    %10 = arith.maximumf %7, %9 : vector<8x128xf32>
    %11 = arith.truncf %10 : vector<8x128xf32> to vector<8x128xbf16>
    %c1 = arith.constant 1 : index
    %c0_8 = arith.constant 0 : index
    %c0_9 = arith.constant 0 : index
    %12 = vector.load %arg2[%c1, %c0_8, %c0_9] : memref<10x128x128xbf16, #tpu.memory_space<vmem>>, vector<1x128x128xbf16>
    %13 = vector.shape_cast %12 : vector<1x128x128xbf16> to vector<128x128xbf16>
    %cst_10 = arith.constant dense<0.000000e+00> : vector<8x128xf32>
    %14 = tpu.matmul %11, %13, %cst_10 {dimension_numbers = #tpu.dot_dimension_numbers<[1], [0], [0], [1], [0, 0, 1, 1], [], []>} : vector<8x128xbf16>, vector<128x128xbf16>, vector<8x128xf32> -> vector<8x128xf32>
    %c1_11 = arith.constant 1 : index
    %c0_12 = arith.constant 0 : index
    %c0_13 = arith.constant 0 : index
    %15 = vector.load %arg3[%c1_11, %c0_12, %c0_13] : memref<10x1x128xf32, #tpu.memory_space<vmem>>, vector<1x1x128xf32>
    %16 = vector.shape_cast %15 : vector<1x1x128xf32> to vector<1x128xf32>
    %17 = vector.broadcast %16 : vector<1x128xf32> to vector<8x128xf32>
    %18 = arith.addf %14, %17 : vector<8x128xf32>
    %cst_14 = arith.constant 0.00999999977 : f32
    %19 = vector.broadcast %cst_14 : f32 to vector<8x128xf32>
    %20 = arith.mulf %19, %18 : vector<8x128xf32>
    %21 = arith.maximumf %18, %20 : vector<8x128xf32>
    %22 = arith.truncf %21 : vector<8x128xf32> to vector<8x128xbf16>
    %c2 = arith.constant 2 : index
    %c0_15 = arith.constant 0 : index
    %c0_16 = arith.constant 0 : index
    %23 = vector.load %arg2[%c2, %c0_15, %c0_16] : memref<10x128x128xbf16, #tpu.memory_space<vmem>>, vector<1x128x128xbf16>
    %24 = vector.shape_cast %23 : vector<1x128x128xbf16> to vector<128x128xbf16>
    %cst_17 = arith.constant dense<0.000000e+00> : vector<8x128xf32>
    %25 = tpu.matmul %22, %24, %cst_17 {dimension_numbers = #tpu.dot_dimension_numbers<[1], [0], [0], [1], [0, 0, 1, 1], [], []>} : vector<8x128xbf16>, vector<128x128xbf16>, vector<8x128xf32> -> vector<8x128xf32>
    %c2_18 = arith.constant 2 : index
    %c0_19 = arith.constant 0 : index
    %c0_20 = arith.constant 0 : index
    %26 = vector.load %arg3[%c2_18, %c0_19, %c0_20] : memref<10x1x128xf32, #tpu.memory_space<vmem>>, vector<1x1x128xf32>
    %27 = vector.shape_cast %26 : vector<1x1x128xf32> to vector<1x128xf32>
    %28 = vector.broadcast %27 : vector<1x128xf32> to vector<8x128xf32>
    %29 = arith.addf %25, %28 : vector<8x128xf32>
    %cst_21 = arith.constant 0.00999999977 : f32
    %30 = vector.broadcast %cst_21 : f32 to vector<8x128xf32>
    %31 = arith.mulf %30, %29 : vector<8x128xf32>
    %32 = arith.maximumf %29, %31 : vector<8x128xf32>
    %33 = arith.truncf %32 : vector<8x128xf32> to vector<8x128xbf16>
    %c3 = arith.constant 3 : index
    %c0_22 = arith.constant 0 : index
    %c0_23 = arith.constant 0 : index
    %34 = vector.load %arg2[%c3, %c0_22, %c0_23] : memref<10x128x128xbf16, #tpu.memory_space<vmem>>, vector<1x128x128xbf16>
    %35 = vector.shape_cast %34 : vector<1x128x128xbf16> to vector<128x128xbf16>
    %cst_24 = arith.constant dense<0.000000e+00> : vector<8x128xf32>
    %36 = tpu.matmul %33, %35, %cst_24 {dimension_numbers = #tpu.dot_dimension_numbers<[1], [0], [0], [1], [0, 0, 1, 1], [], []>} : vector<8x128xbf16>, vector<128x128xbf16>, vector<8x128xf32> -> vector<8x128xf32>
    %c3_25 = arith.constant 3 : index
    %c0_26 = arith.constant 0 : index
    %c0_27 = arith.constant 0 : index
    %37 = vector.load %arg3[%c3_25, %c0_26, %c0_27] : memref<10x1x128xf32, #tpu.memory_space<vmem>>, vector<1x1x128xf32>
    %38 = vector.shape_cast %37 : vector<1x1x128xf32> to vector<1x128xf32>
    %39 = vector.broadcast %38 : vector<1x128xf32> to vector<8x128xf32>
    %40 = arith.addf %36, %39 : vector<8x128xf32>
    %cst_28 = arith.constant 0.00999999977 : f32
    %41 = vector.broadcast %cst_28 : f32 to vector<8x128xf32>
    %42 = arith.mulf %41, %40 : vector<8x128xf32>
    %43 = arith.maximumf %40, %42 : vector<8x128xf32>
    %44 = arith.truncf %43 : vector<8x128xf32> to vector<8x128xbf16>
    %c4 = arith.constant 4 : index
    %c0_29 = arith.constant 0 : index
    %c0_30 = arith.constant 0 : index
    %45 = vector.load %arg2[%c4, %c0_29, %c0_30] : memref<10x128x128xbf16, #tpu.memory_space<vmem>>, vector<1x128x128xbf16>
    %46 = vector.shape_cast %45 : vector<1x128x128xbf16> to vector<128x128xbf16>
    %cst_31 = arith.constant dense<0.000000e+00> : vector<8x128xf32>
    %47 = tpu.matmul %44, %46, %cst_31 {dimension_numbers = #tpu.dot_dimension_numbers<[1], [0], [0], [1], [0, 0, 1, 1], [], []>} : vector<8x128xbf16>, vector<128x128xbf16>, vector<8x128xf32> -> vector<8x128xf32>
    %c4_32 = arith.constant 4 : index
    %c0_33 = arith.constant 0 : index
    %c0_34 = arith.constant 0 : index
    %48 = vector.load %arg3[%c4_32, %c0_33, %c0_34] : memref<10x1x128xf32, #tpu.memory_space<vmem>>, vector<1x1x128xf32>
    %49 = vector.shape_cast %48 : vector<1x1x128xf32> to vector<1x128xf32>
    %50 = vector.broadcast %49 : vector<1x128xf32> to vector<8x128xf32>
    %51 = arith.addf %47, %50 : vector<8x128xf32>
    %cst_35 = arith.constant 0.00999999977 : f32
    %52 = vector.broadcast %cst_35 : f32 to vector<8x128xf32>
    %53 = arith.mulf %52, %51 : vector<8x128xf32>
    %54 = arith.maximumf %51, %53 : vector<8x128xf32>
    %55 = arith.truncf %54 : vector<8x128xf32> to vector<8x128xbf16>
    %c5 = arith.constant 5 : index
    %c0_36 = arith.constant 0 : index
    %c0_37 = arith.constant 0 : index
    %56 = vector.load %arg2[%c5, %c0_36, %c0_37] : memref<10x128x128xbf16, #tpu.memory_space<vmem>>, vector<1x128x128xbf16>
    %57 = vector.shape_cast %56 : vector<1x128x128xbf16> to vector<128x128xbf16>
    %cst_38 = arith.constant dense<0.000000e+00> : vector<8x128xf32>
    %58 = tpu.matmul %55, %57, %cst_38 {dimension_numbers = #tpu.dot_dimension_numbers<[1], [0], [0], [1], [0, 0, 1, 1], [], []>} : vector<8x128xbf16>, vector<128x128xbf16>, vector<8x128xf32> -> vector<8x128xf32>
    %c5_39 = arith.constant 5 : index
    %c0_40 = arith.constant 0 : index
    %c0_41 = arith.constant 0 : index
    %59 = vector.load %arg3[%c5_39, %c0_40, %c0_41] : memref<10x1x128xf32, #tpu.memory_space<vmem>>, vector<1x1x128xf32>
    %60 = vector.shape_cast %59 : vector<1x1x128xf32> to vector<1x128xf32>
    %61 = vector.broadcast %60 : vector<1x128xf32> to vector<8x128xf32>
    %62 = arith.addf %58, %61 : vector<8x128xf32>
    %cst_42 = arith.constant 0.00999999977 : f32
    %63 = vector.broadcast %cst_42 : f32 to vector<8x128xf32>
    %64 = arith.mulf %63, %62 : vector<8x128xf32>
    %65 = arith.maximumf %62, %64 : vector<8x128xf32>
    %66 = arith.truncf %65 : vector<8x128xf32> to vector<8x128xbf16>
    %c6 = arith.constant 6 : index
    %c0_43 = arith.constant 0 : index
    %c0_44 = arith.constant 0 : index
    %67 = vector.load %arg2[%c6, %c0_43, %c0_44] : memref<10x128x128xbf16, #tpu.memory_space<vmem>>, vector<1x128x128xbf16>
    %68 = vector.shape_cast %67 : vector<1x128x128xbf16> to vector<128x128xbf16>
    %cst_45 = arith.constant dense<0.000000e+00> : vector<8x128xf32>
    %69 = tpu.matmul %66, %68, %cst_45 {dimension_numbers = #tpu.dot_dimension_numbers<[1], [0], [0], [1], [0, 0, 1, 1], [], []>} : vector<8x128xbf16>, vector<128x128xbf16>, vector<8x128xf32> -> vector<8x128xf32>
    %c6_46 = arith.constant 6 : index
    %c0_47 = arith.constant 0 : index
    %c0_48 = arith.constant 0 : index
    %70 = vector.load %arg3[%c6_46, %c0_47, %c0_48] : memref<10x1x128xf32, #tpu.memory_space<vmem>>, vector<1x1x128xf32>
    %71 = vector.shape_cast %70 : vector<1x1x128xf32> to vector<1x128xf32>
    %72 = vector.broadcast %71 : vector<1x128xf32> to vector<8x128xf32>
    %73 = arith.addf %69, %72 : vector<8x128xf32>
    %cst_49 = arith.constant 0.00999999977 : f32
    %74 = vector.broadcast %cst_49 : f32 to vector<8x128xf32>
    %75 = arith.mulf %74, %73 : vector<8x128xf32>
    %76 = arith.maximumf %73, %75 : vector<8x128xf32>
    %77 = arith.truncf %76 : vector<8x128xf32> to vector<8x128xbf16>
    %c7 = arith.constant 7 : index
    %c0_50 = arith.constant 0 : index
    %c0_51 = arith.constant 0 : index
    %78 = vector.load %arg2[%c7, %c0_50, %c0_51] : memref<10x128x128xbf16, #tpu.memory_space<vmem>>, vector<1x128x128xbf16>
    %79 = vector.shape_cast %78 : vector<1x128x128xbf16> to vector<128x128xbf16>
    %cst_52 = arith.constant dense<0.000000e+00> : vector<8x128xf32>
    %80 = tpu.matmul %77, %79, %cst_52 {dimension_numbers = #tpu.dot_dimension_numbers<[1], [0], [0], [1], [0, 0, 1, 1], [], []>} : vector<8x128xbf16>, vector<128x128xbf16>, vector<8x128xf32> -> vector<8x128xf32>
    %c7_53 = arith.constant 7 : index
    %c0_54 = arith.constant 0 : index
    %c0_55 = arith.constant 0 : index
    %81 = vector.load %arg3[%c7_53, %c0_54, %c0_55] : memref<10x1x128xf32, #tpu.memory_space<vmem>>, vector<1x1x128xf32>
    %82 = vector.shape_cast %81 : vector<1x1x128xf32> to vector<1x128xf32>
    %83 = vector.broadcast %82 : vector<1x128xf32> to vector<8x128xf32>
    %84 = arith.addf %80, %83 : vector<8x128xf32>
    %cst_56 = arith.constant 0.00999999977 : f32
    %85 = vector.broadcast %cst_56 : f32 to vector<8x128xf32>
    %86 = arith.mulf %85, %84 : vector<8x128xf32>
    %87 = arith.maximumf %84, %86 : vector<8x128xf32>
    %88 = arith.truncf %87 : vector<8x128xf32> to vector<8x128xbf16>
    %c8 = arith.constant 8 : index
    %c0_57 = arith.constant 0 : index
    %c0_58 = arith.constant 0 : index
    %89 = vector.load %arg2[%c8, %c0_57, %c0_58] : memref<10x128x128xbf16, #tpu.memory_space<vmem>>, vector<1x128x128xbf16>
    %90 = vector.shape_cast %89 : vector<1x128x128xbf16> to vector<128x128xbf16>
    %cst_59 = arith.constant dense<0.000000e+00> : vector<8x128xf32>
    %91 = tpu.matmul %88, %90, %cst_59 {dimension_numbers = #tpu.dot_dimension_numbers<[1], [0], [0], [1], [0, 0, 1, 1], [], []>} : vector<8x128xbf16>, vector<128x128xbf16>, vector<8x128xf32> -> vector<8x128xf32>
    %c8_60 = arith.constant 8 : index
    %c0_61 = arith.constant 0 : index
    %c0_62 = arith.constant 0 : index
    %92 = vector.load %arg3[%c8_60, %c0_61, %c0_62] : memref<10x1x128xf32, #tpu.memory_space<vmem>>, vector<1x1x128xf32>
    %93 = vector.shape_cast %92 : vector<1x1x128xf32> to vector<1x128xf32>
    %94 = vector.broadcast %93 : vector<1x128xf32> to vector<8x128xf32>
    %95 = arith.addf %91, %94 : vector<8x128xf32>
    %cst_63 = arith.constant 0.00999999977 : f32
    %96 = vector.broadcast %cst_63 : f32 to vector<8x128xf32>
    %97 = arith.mulf %96, %95 : vector<8x128xf32>
    %98 = arith.maximumf %95, %97 : vector<8x128xf32>
    %99 = arith.truncf %98 : vector<8x128xf32> to vector<8x128xbf16>
    %c9 = arith.constant 9 : index
    %c0_64 = arith.constant 0 : index
    %c0_65 = arith.constant 0 : index
    %100 = vector.load %arg2[%c9, %c0_64, %c0_65] : memref<10x128x128xbf16, #tpu.memory_space<vmem>>, vector<1x128x128xbf16>
    %101 = vector.shape_cast %100 : vector<1x128x128xbf16> to vector<128x128xbf16>
    %cst_66 = arith.constant dense<0.000000e+00> : vector<8x128xf32>
    %102 = tpu.matmul %99, %101, %cst_66 {dimension_numbers = #tpu.dot_dimension_numbers<[1], [0], [0], [1], [0, 0, 1, 1], [], []>} : vector<8x128xbf16>, vector<128x128xbf16>, vector<8x128xf32> -> vector<8x128xf32>
    %c9_67 = arith.constant 9 : index
    %c0_68 = arith.constant 0 : index
    %c0_69 = arith.constant 0 : index
    %103 = vector.load %arg3[%c9_67, %c0_68, %c0_69] : memref<10x1x128xf32, #tpu.memory_space<vmem>>, vector<1x1x128xf32>
    %104 = vector.shape_cast %103 : vector<1x1x128xf32> to vector<1x128xf32>
    %105 = vector.broadcast %104 : vector<1x128xf32> to vector<8x128xf32>
    %106 = arith.addf %102, %105 : vector<8x128xf32>
    %c0_70 = arith.constant 0 : index
    %c0_71 = arith.constant 0 : index
    %107 = vector.load %arg4[%c0_70, %c0_71] : memref<8x128xf32, #tpu.memory_space<vmem>>, vector<8x128xf32>
    tpu.vector_store %arg4[%c0_70, %c0_71], %106 {strides = array<i32>} : memref<8x128xf32, #tpu.memory_space<vmem>>, vector<8x128xf32>,
    return
  }
  func.func @transform_0(%arg0: i32) -> (i32, i32) {
    %c0_i32 = arith.constant 0 : i32
    %c0_i32_0 = arith.constant 0 : i32
    return %arg0, %c0_i32 : i32, i32
  }
  func.func @transform_1(%arg0: i32) -> (i32, i32, i32) {
    %c0_i32 = arith.constant 0 : i32
    %c0_i32_0 = arith.constant 0 : i32
    %c0_i32_1 = arith.constant 0 : i32
    %c0_i32_2 = arith.constant 0 : i32
    return %c0_i32, %c0_i32_0, %c0_i32_1 : i32, i32, i32
  }
  func.func @transform_2(%arg0: i32) -> (i32, i32, i32) {
    %c0_i32 = arith.constant 0 : i32
    %c0_i32_0 = arith.constant 0 : i32
    %c0_i32_1 = arith.constant 0 : i32
    %c0_i32_2 = arith.constant 0 : i32
    return %c0_i32, %c0_i32_0, %c0_i32_1 : i32, i32, i32
  }
  func.func @transform_3(%arg0: i32) -> (i32, i32) {
    %c0_i32 = arith.constant 0 : i32
    %c0_i32_0 = arith.constant 0 : i32
    return %arg0, %c0_i32 : i32, i32
  }
}

</mosaic_0001>

<bundles_post_ra>
// kernel: dnn_model9_forward.1
= control target key start
LH: loop header
LB: loop body
LE: loop exit
PB: predicated region body
PF: predicated region fallthrough
CT: control target
= control target key end

     0   :  { %8 = vsyncpa [#allocation3], 0  ;;  %s1689_s12 = smov [#allocation2]   ;;  %s1862_s0 = inlined_call_operand.vmem [shape: bf16[8,128], index: 0, kind: input, shape index: {}]   ;;  %s1863_s1 = inlined_call_operand.hbm [shape: bf16[10,128,128], index: 1, kind: input, shape index: {}]   ;;  %s1864_s2 = inlined_call_operand.vmem [shape: f32[10,1,128], index: 2, kind: input, shape index: {}]   ;;  %s1865_s3 = inlined_call_operand.vmem [shape: f32[8,128], index: 3, kind: output, shape index: {}]  }
   0x1   :  { %s16_s13 = sshll.u32 %s1689_s12, 4  ;;  %s1665_s16 = scalar_lea.hbm %s1863_s1, 10240  ;;  %s17_s13 = int_to_ptr.vmem [resolvable:$true] %s16_s13 }
   0x2   :  { %p1666_p0 = scmp.ne.s32.totalorder %s1863_s1, %s1665_s16  ;;  %p1669_p1 = scmp.lt.u32.totalorder %s1665_s16, %s1863_s1 }
   0x4   :  { %p1671_p2 = pnand %p1669_p1, %p1666_p0 }
   0x6   :  { %1674 = shalt.err (!%p1671_p2)
}
   0x7   :  { %s1675_s21 = scalar_lea.vmem %s17_s13, 10240  ;;  %p1680_p4 = scmp.lt.s32.totalorder %s17_s13, %s17_s13 }
   0x8   :  { %p1676_p3 = scmp.ne.s32.totalorder %s17_s13, %s1675_s21  ;;  %p1681_p5 = scmp.lt.s32.totalorder %s1675_s21, %s1675_s21 }
   0xa   :  { %p1682_p6 = por %p1681_p5, %p1680_p4 }
   0xc   :  { %p1683_p7 = pnand %p1682_p6, %p1676_p3 }
   0xe   :  { %1686 = shalt.err (!%p1683_p7)
}
   0xf   :  { %s1690_s22 = smov 64   ;;  %s1691_s23 = smov 4  }
  0x10   :  { %22 = dma.hbm_to_vmem [thread:$0]  %s1863_s1, 10240, %s17_s13, [#allocation3], %s1690_s22, %s1690_s22, %s1691_s23  }
  0x11   :  { %1687 = dma.done.wait [#allocation3], 10240  }
  0x12   :  { %1688 = vsyncadd [#allocation3], 4294957056  ;;  %v1692_v0 = vmov 0.0   ;;  %vm1693_vm0 = vmmov 0   ;;  %v1585_v1 = vld [vmem:[#allocation2] sm:$0xff]   ;;  %v1586_v2 = vld [vmem:[#allocation2 + $0x8] sm:$0xff]  }
  0x13   :  { %1380 = vmatprep.subr.bf16.mxu0 %v1692_v0  ;;  %1396 = vmatprep.mubr.msk.bf16.mxu0 %vm1693_vm0, %v1692_v0  ;;  %v1587_v3 = vld [vmem:[#allocation2 + $0x10] sm:$0xff]   ;;  %v1593_v4 = vld [vmem:[#allocation2 + $0x40] sm:$0xff]   ;;  %v1588_v5 = vld [vmem:[#allocation2 + $0x18] sm:$0xff]  }
  0x14   :  { %1400 = vmatprep.subr.bf16.mxu1 %v1692_v0  ;;  %1416 = vmatprep.mubr.msk.bf16.mxu1 %vm1693_vm0, %v1692_v0  ;;  %v1594_v6 = vld [vmem:[#allocation2 + $0x48] sm:$0xff]   ;;  %v1589_v7 = vld [vmem:[#allocation2 + $0x20] sm:$0xff]   ;;  %v1595_v8 = vld [vmem:[#allocation2 + $0x50] sm:$0xff]  }
  0x15   :  { %1381 = vmatpush3.bf16.msra.mxu0 %v1585_v1  ;;  %1401 = vmatpush3.bf16.msra.mxu1 %v1593_v4  ;;  %v1590_v9 = vld [vmem:[#allocation2 + $0x28] sm:$0xff]   ;;  %v1596_v10 = vld [vmem:[#allocation2 + $0x58] sm:$0xff]   ;;  %v1591_v11 = vld [vmem:[#allocation2 + $0x30] sm:$0xff]  }
  0x16   :  { %1382 = vmatprep.subr.bf16.mxu0 %v1692_v0  ;;  %1402 = vmatprep.subr.bf16.mxu1 %v1692_v0  ;;  %v1597_v12 = vld [vmem:[#allocation2 + $0x60] sm:$0xff]   ;;  %v1592_v13 = vld [vmem:[#allocation2 + $0x38] sm:$0xff]   ;;  %v1598_v14 = vld [vmem:[#allocation2 + $0x68] sm:$0xff]  }
  0x17   :  { %v29_v15 = vld [vmem:[%s1862_s0] sm:$0xf]  ;;  %v1599_v16 = vld [vmem:[#allocation2 + $0x70] sm:$0xff]   ;;  %v1600_v17 = vld [vmem:[#allocation2 + $0x78] sm:$0xff]  }
  0x18   :  { %v1601_v18 = vld [vmem:[#allocation2 + $0x80] sm:$0xff]   ;;  %v1602_v19 = vld [vmem:[#allocation2 + $0x88] sm:$0xff]   ;;  %v1603_v20 = vld [vmem:[#allocation2 + $0x90] sm:$0xff]  }
  0x19   :  { %1383 = vmatpush3.bf16.msra.mxu0 %v1586_v2  ;;  %1403 = vmatpush3.bf16.msra.mxu1 %v1594_v6  ;;  %v1604_v21 = vld [vmem:[#allocation2 + $0x98] sm:$0xff]   ;;  %v1605_v22 = vld [vmem:[#allocation2 + $0xa0] sm:$0xff]   ;;  %v1606_v23 = vld [vmem:[#allocation2 + $0xa8] sm:$0xff]  }
  0x1a   :  { %1384 = vmatprep.subr.bf16.mxu0 %v1692_v0  ;;  %1404 = vmatprep.subr.bf16.mxu1 %v1692_v0  ;;  %v1191_v24 = vld [vmem:[%s1864_s2] ss:$0 sm:$0xff]  ;;  %v1607_v33 = vld [vmem:[#allocation2 + $0xb0] sm:$0xff]   ;;  %v1608_v34 = vld [vmem:[#allocation2 + $0xb8] sm:$0xff]  }
  0x1b   :  { %v1609_v35 = vld [vmem:[#allocation2 + $0xc0] sm:$0xff]   ;;  %v1610_v36 = vld [vmem:[#allocation2 + $0xc8] sm:$0xff]   ;;  %v1611_v37 = vld [vmem:[#allocation2 + $0xd0] sm:$0xff]  }
  0x1c   :  { %v1612_v38 = vld [vmem:[#allocation2 + $0xd8] sm:$0xff]   ;;  %v1613_v39 = vld [vmem:[#allocation2 + $0xe0] sm:$0xff]   ;;  %v1614_v40 = vld [vmem:[#allocation2 + $0xe8] sm:$0xff]  }
  0x1d   :  { %1385 = vmatpush3.bf16.msra.mxu0 %v1587_v3  ;;  %1405 = vmatpush3.bf16.msra.mxu1 %v1595_v8  ;;  %v1201_v41 = vld [vmem:[%s1864_s2 + $0x1] ss:$0 sm:$0xff]  ;;  %v1615_v50 = vld [vmem:[#allocation2 + $0xf0] sm:$0xff]   ;;  %v1616_v51 = vld [vmem:[#allocation2 + $0xf8] sm:$0xff]  }
  0x1e   :  { %1386 = vmatprep.subr.bf16.mxu0 %v1692_v0  ;;  %1406 = vmatprep.subr.bf16.mxu1 %v1692_v0  ;;  %v1617_v52 = vld [vmem:[#allocation2 + $0x100] sm:$0xff]   ;;  %v1618_v53 = vld [vmem:[#allocation2 + $0x108] sm:$0xff]   ;;  %v1619_v54 = vld [vmem:[#allocation2 + $0x110] sm:$0xff]  }
  0x1f   :  { %v1620_v55 = vld [vmem:[#allocation2 + $0x118] sm:$0xff]   ;;  %v1621_v56 = vld [vmem:[#allocation2 + $0x120] sm:$0xff]   ;;  %v1622_v57 = vld [vmem:[#allocation2 + $0x128] sm:$0xff]  }
  0x20   :  { %v1211_v58 = vld [vmem:[%s1864_s2 + $0x2] ss:$0 sm:$0xff]  ;;  %v1623_v4 = vld [vmem:[#allocation2 + $0x130] sm:$0xff]  }
  0x21   :  { %1387 = vmatpush3.bf16.msra.mxu0 %v1588_v5  ;;  %1407 = vmatpush3.bf16.msra.mxu1 %v1596_v10  ;;  %v1624_v5 = vld [vmem:[#allocation2 + $0x138] sm:$0xff]   ;;  %v1625_v6 = vld [vmem:[#allocation2 + $0x140] sm:$0xff]   ;;  %v1627_v8 = vld [vmem:[#allocation2 + $0x150] sm:$0xff]  }
  0x22   :  { %1388 = vmatprep.subr.bf16.mxu0 %v1692_v0  ;;  %1408 = vmatprep.subr.bf16.mxu1 %v1692_v0  ;;  %v1629_v10 = vld [vmem:[#allocation2 + $0x160] sm:$0xff]  }
  0x25   :  { %1389 = vmatpush3.bf16.msra.mxu0 %v1589_v7  ;;  %1409 = vmatpush3.bf16.msra.mxu1 %v1597_v12  ;;  %v1626_v7 = vld [vmem:[#allocation2 + $0x148] sm:$0xff]   ;;  %v1221_v12 = vld [vmem:[%s1864_s2 + $0x3] ss:$0 sm:$0xff] }
  0x26   :  { %1390 = vmatprep.subr.bf16.mxu0 %v1692_v0  ;;  %1410 = vmatprep.subr.bf16.mxu1 %v1692_v0 }
  0x29   :  { %1391 = vmatpush3.bf16.msra.mxu0 %v1590_v9  ;;  %1411 = vmatpush3.bf16.msra.mxu1 %v1598_v14  ;;  %v1628_v9 = vld [vmem:[#allocation2 + $0x158] sm:$0xff]  }
  0x2a   :  { %1392 = vmatprep.subr.bf16.mxu0 %v1692_v0  ;;  %1412 = vmatprep.subr.bf16.mxu1 %v1692_v0 }
  0x2d   :  { %1393 = vmatpush3.bf16.msra.mxu0 %v1591_v11  ;;  %1413 = vmatpush3.bf16.msra.mxu1 %v1599_v16  ;;  %v1630_v11 = vld [vmem:[#allocation2 + $0x168] sm:$0xff]  }
  0x2e   :  { %1394 = vmatprep.subr.bf16.mxu0 %v1692_v0  ;;  %1414 = vmatprep.subr.bf16.mxu1 %v1692_v0 }
  0x31   :  { %1395 = vmatpush3.bf16.msra.mxu0 %v1592_v13  ;;  %1415 = vmatpush3.bf16.msra.mxu1 %v1600_v17 }
  0x32   :  { %1420 = vmatprep.subr.bf16.mxu0 %v1692_v0  ;;  %1440 = vmatprep.subr.bf16.mxu1 %v1692_v0 }
  0x34   :  { %1397 = vmatmul.mubr.bf16.vlgmr.msra.gmra.mrb[0].mxu0 %v29_v15 }
  0x35   :  { %1436 = vmatprep.mubr.msk.bf16.mxu0 %vm1693_vm0, %v1692_v0  ;;  %1421 = vmatpush3.bf16.msra.mxu0 %v1601_v18 }
  0x36   :  { %1422 = vmatprep.subr.bf16.mxu0 %v1692_v0 }
  0x39   :  { %1423 = vmatpush3.bf16.msra.mxu0 %v1602_v19 }
  0x3a   :  { %1424 = vmatprep.subr.bf16.mxu0 %v1692_v0 }
  0x3d   :  { %1425 = vmatpush3.bf16.msra.mxu0 %v1603_v20 }
  0x3e   :  { %1426 = vmatprep.subr.bf16.mxu0 %v1692_v0 }
  0x41   :  { %1427 = vmatpush3.bf16.msra.mxu0 %v1604_v21  ;;  %v1631_v21 = vld [vmem:[#allocation2 + $0x170] sm:$0xff]  }
  0x42   :  { %1428 = vmatprep.subr.bf16.mxu0 %v1692_v0 }
  0x45   :  { %1429 = vmatpush3.bf16.msra.mxu0 %v1605_v22  ;;  %v1632_v22 = vld [vmem:[#allocation2 + $0x178] sm:$0xff]  }
  0x46   :  { %1430 = vmatprep.subr.bf16.mxu0 %v1692_v0 }
  0x49   :  { %1431 = vmatpush3.bf16.msra.mxu0 %v1606_v23  ;;  %v1633_v23 = vld [vmem:[#allocation2 + $0x180] sm:$0xff]  }
  0x4a   :  { %1432 = vmatprep.subr.bf16.mxu0 %v1692_v0 }
  0x4d   :  { %1433 = vmatpush3.bf16.msra.mxu0 %v1607_v33 }
  0x4e   :  { %1434 = vmatprep.subr.bf16.mxu0 %v1692_v0 }
  0x51   :  { %1435 = vmatpush3.bf16.msra.mxu0 %v1608_v34 }
  0x52   :  { %1460 = vmatprep.subr.bf16.mxu0 %v1692_v0 }
 0x107   :  { %v135_v25 = vpop.f32.mrb[0].mxu0 }
 0x108   :  { %v136_v26 = vadd.f32 %v1191_v24, %v135_v25  ;;  %v1398_v27 = vpop.f32.mrb[1].mxu0  ;;  %v1634_v24 = vld [vmem:[#allocation2 + $0x188] sm:$0xff]   ;;  %v1635_v25 = vld [vmem:[#allocation2 + $0x190] sm:$0xff]  }
 0x109   :  { %v138_v28 = vpop.f32.mrb[2].mxu0  ;;  %v1637_v27 = vld [vmem:[#allocation2 + $0x1a0] sm:$0xff]  }
 0x10a   :  { %v141_v29 = vmul.f32 0.01, %v136_v26  ;;  %v1399_v30 = vpop.f32.mrb[3].mxu0  ;;  %v1638_v28 = vld [vmem:[#allocation2 + $0x1a8] sm:$0xff]  }
 0x10c   :  { %v142_v31 = vmax.f32 %v136_v26, %v141_v29  ;;  %v1636_v26 = vld [vmem:[#allocation2 + $0x198] sm:$0xff]   ;;  %v1231_v29 = vld [vmem:[%s1864_s2 + $0x4] ss:$0 sm:$0xff] }
 0x10e   :  { %v143_v32 = vpack.c.bf16 %v142_v31, %v142_v31 }
 0x110   :  { %1417 = vmatmul.mubr.bf16.vlgmr.msra.gmra.mrb[0].mxu1 %v143_v32 }
 0x111   :  { %1456 = vmatprep.mubr.msk.bf16.mxu1 %vm1693_vm0, %v1692_v0  ;;  %1441 = vmatpush3.bf16.msra.mxu1 %v1609_v35 }
 0x112   :  { %1442 = vmatprep.subr.bf16.mxu1 %v1692_v0 }
 0x115   :  { %1443 = vmatpush3.bf16.msra.mxu1 %v1610_v36 }
 0x116   :  { %1444 = vmatprep.subr.bf16.mxu1 %v1692_v0 }
 0x119   :  { %1445 = vmatpush3.bf16.msra.mxu1 %v1611_v37 }
 0x11a   :  { %1446 = vmatprep.subr.bf16.mxu1 %v1692_v0 }
 0x11d   :  { %1447 = vmatpush3.bf16.msra.mxu1 %v1612_v38  ;;  %v1639_v38 = vld [vmem:[#allocation2 + $0x1b0] sm:$0xff]  }
 0x11e   :  { %1448 = vmatprep.subr.bf16.mxu1 %v1692_v0 }
 0x121   :  { %1449 = vmatpush3.bf16.msra.mxu1 %v1613_v39  ;;  %v1640_v39 = vld [vmem:[#allocation2 + $0x1b8] sm:$0xff]  }
 0x122   :  { %1450 = vmatprep.subr.bf16.mxu1 %v1692_v0 }
 0x125   :  { %1451 = vmatpush3.bf16.msra.mxu1 %v1614_v40  ;;  %v1641_v40 = vld [vmem:[#allocation2 + $0x1c0] sm:$0xff]  }
 0x126   :  { %1452 = vmatprep.subr.bf16.mxu1 %v1692_v0 }
 0x129   :  { %1453 = vmatpush3.bf16.msra.mxu1 %v1615_v50 }
 0x12a   :  { %1454 = vmatprep.subr.bf16.mxu1 %v1692_v0 }
 0x12d   :  { %1455 = vmatpush3.bf16.msra.mxu1 %v1616_v51 }
 0x12e   :  { %1480 = vmatprep.subr.bf16.mxu1 %v1692_v0 }
 0x1e3   :  { %v251_v42 = vpop.f32.mrb[0].mxu1 }
 0x1e4   :  { %v252_v43 = vadd.f32 %v1201_v41, %v251_v42  ;;  %v1418_v44 = vpop.f32.mrb[1].mxu1  ;;  %v1642_v41 = vld [vmem:[#allocation2 + $0x1c8] sm:$0xff]   ;;  %v1643_v42 = vld [vmem:[#allocation2 + $0x1d0] sm:$0xff]  }
 0x1e5   :  { %v254_v45 = vpop.f32.mrb[2].mxu1  ;;  %v1645_v44 = vld [vmem:[#allocation2 + $0x1e0] sm:$0xff]  }
 0x1e6   :  { %v257_v46 = vmul.f32 0.01, %v252_v43  ;;  %v1419_v47 = vpop.f32.mrb[3].mxu1  ;;  %v1646_v45 = vld [vmem:[#allocation2 + $0x1e8] sm:$0xff]  }
 0x1e8   :  { %v258_v48 = vmax.f32 %v252_v43, %v257_v46  ;;  %v1644_v43 = vld [vmem:[#allocation2 + $0x1d8] sm:$0xff]   ;;  %v1241_v46 = vld [vmem:[%s1864_s2 + $0x5] ss:$0 sm:$0xff] }
 0x1ea   :  { %v259_v49 = vpack.c.bf16 %v258_v48, %v258_v48 }
 0x1ec   :  { %1437 = vmatmul.mubr.bf16.vlgmr.msra.gmra.mrb[4].mxu0 %v259_v49 }
 0x1ed   :  { %1476 = vmatprep.mubr.msk.bf16.mxu0 %vm1693_vm0, %v1692_v0  ;;  %1461 = vmatpush3.bf16.msra.mxu0 %v1617_v52 }
 0x1ee   :  { %1462 = vmatprep.subr.bf16.mxu0 %v1692_v0 }
 0x1f1   :  { %1463 = vmatpush3.bf16.msra.mxu0 %v1618_v53 }
 0x1f2   :  { %1464 = vmatprep.subr.bf16.mxu0 %v1692_v0 }
 0x1f5   :  { %1465 = vmatpush3.bf16.msra.mxu0 %v1619_v54 }
 0x1f6   :  { %1466 = vmatprep.subr.bf16.mxu0 %v1692_v0 }
 0x1f9   :  { %1467 = vmatpush3.bf16.msra.mxu0 %v1620_v55  ;;  %v1647_v55 = vld [vmem:[#allocation2 + $0x1f0] sm:$0xff]  }
 0x1fa   :  { %1468 = vmatprep.subr.bf16.mxu0 %v1692_v0 }
 0x1fd   :  { %1469 = vmatpush3.bf16.msra.mxu0 %v1621_v56  ;;  %v1648_v56 = vld [vmem:[#allocation2 + $0x1f8] sm:$0xff]  }
 0x1fe   :  { %1470 = vmatprep.subr.bf16.mxu0 %v1692_v0 }
 0x201   :  { %1471 = vmatpush3.bf16.msra.mxu0 %v1622_v57  ;;  %v1649_v57 = vld [vmem:[#allocation2 + $0x200] sm:$0xff]  }
 0x202   :  { %1472 = vmatprep.subr.bf16.mxu0 %v1692_v0 }
 0x205   :  { %1473 = vmatpush3.bf16.msra.mxu0 %v1623_v4 }
 0x206   :  { %1474 = vmatprep.subr.bf16.mxu0 %v1692_v0 }
 0x209   :  { %1475 = vmatpush3.bf16.msra.mxu0 %v1624_v5 }
 0x20a   :  { %1500 = vmatprep.subr.bf16.mxu0 %v1692_v0 }
 0x2bf   :  { %v367_v59 = vpop.f32.mrb[4].mxu0 }
 0x2c0   :  { %v368_v60 = vadd.f32 %v1211_v58, %v367_v59  ;;  %v1438_v61 = vpop.f32.mrb[5].mxu0  ;;  %v1650_v58 = vld [vmem:[#allocation2 + $0x208] sm:$0xff]   ;;  %v1651_v59 = vld [vmem:[#allocation2 + $0x210] sm:$0xff]  }
 0x2c1   :  { %v370_v62 = vpop.f32.mrb[6].mxu0  ;;  %v1653_v61 = vld [vmem:[#allocation2 + $0x220] sm:$0xff]  }
 0x2c2   :  { %v373_v63 = vmul.f32 0.01, %v368_v60  ;;  %v1439_v1 = vpop.f32.mrb[7].mxu0  ;;  %v1654_v62 = vld [vmem:[#allocation2 + $0x228] sm:$0xff]  }
 0x2c4   :  { %v374_v2 = vmax.f32 %v368_v60, %v373_v63  ;;  %v1652_v60 = vld [vmem:[#allocation2 + $0x218] sm:$0xff]   ;;  %v1251_v63 = vld [vmem:[%s1864_s2 + $0x6] ss:$0 sm:$0xff] }
 0x2c6   :  { %v375_v3 = vpack.c.bf16 %v374_v2, %v374_v2 }
 0x2c8   :  { %1457 = vmatmul.mubr.bf16.vlgmr.msra.gmra.mrb[4].mxu1 %v375_v3 }
 0x2c9   :  { %1496 = vmatprep.mubr.msk.bf16.mxu1 %vm1693_vm0, %v1692_v0  ;;  %1481 = vmatpush3.bf16.msra.mxu1 %v1625_v6 }
 0x2ca   :  { %1482 = vmatprep.subr.bf16.mxu1 %v1692_v0 }
 0x2cd   :  { %1483 = vmatpush3.bf16.msra.mxu1 %v1626_v7 }
 0x2ce   :  { %1484 = vmatprep.subr.bf16.mxu1 %v1692_v0 }
 0x2d1   :  { %1485 = vmatpush3.bf16.msra.mxu1 %v1627_v8 }
 0x2d2   :  { %1486 = vmatprep.subr.bf16.mxu1 %v1692_v0 }
 0x2d5   :  { %1487 = vmatpush3.bf16.msra.mxu1 %v1628_v9  ;;  %v1655_v9 = vld [vmem:[#allocation2 + $0x230] sm:$0xff]  }
 0x2d6   :  { %1488 = vmatprep.subr.bf16.mxu1 %v1692_v0 }
 0x2d9   :  { %1489 = vmatpush3.bf16.msra.mxu1 %v1629_v10  ;;  %v1656_v10 = vld [vmem:[#allocation2 + $0x238] sm:$0xff]  }
 0x2da   :  { %1490 = vmatprep.subr.bf16.mxu1 %v1692_v0 }
 0x2dd   :  { %1491 = vmatpush3.bf16.msra.mxu1 %v1630_v11  ;;  %v1657_v11 = vld [vmem:[#allocation2 + $0x240] sm:$0xff]  }
 0x2de   :  { %1492 = vmatprep.subr.bf16.mxu1 %v1692_v0 }
 0x2e1   :  { %1493 = vmatpush3.bf16.msra.mxu1 %v1631_v21 }
 0x2e2   :  { %1494 = vmatprep.subr.bf16.mxu1 %v1692_v0 }
 0x2e5   :  { %1495 = vmatpush3.bf16.msra.mxu1 %v1632_v22 }
 0x2e6   :  { %1520 = vmatprep.subr.bf16.mxu1 %v1692_v0 }
 0x39b   :  { %v483_v13 = vpop.f32.mrb[4].mxu1 }
 0x39c   :  { %v484_v14 = vadd.f32 %v1221_v12, %v483_v13  ;;  %v1458_v15 = vpop.f32.mrb[5].mxu1  ;;  %v1658_v12 = vld [vmem:[#allocation2 + $0x248] sm:$0xff]   ;;  %v1659_v13 = vld [vmem:[#allocation2 + $0x250] sm:$0xff]  }
 0x39d   :  { %v486_v16 = vpop.f32.mrb[6].mxu1  ;;  %v1661_v15 = vld [vmem:[#allocation2 + $0x260] sm:$0xff]  }
 0x39e   :  { %v489_v17 = vmul.f32 0.01, %v484_v14  ;;  %v1459_v18 = vpop.f32.mrb[7].mxu1  ;;  %v1662_v16 = vld [vmem:[#allocation2 + $0x268] sm:$0xff]  }
 0x3a0   :  { %v490_v19 = vmax.f32 %v484_v14, %v489_v17  ;;  %v1660_v14 = vld [vmem:[#allocation2 + $0x258] sm:$0xff]   ;;  %v1261_v17 = vld [vmem:[%s1864_s2 + $0x7] ss:$0 sm:$0xff] }
 0x3a2   :  { %v491_v20 = vpack.c.bf16 %v490_v19, %v490_v19 }
 0x3a4   :  { %1477 = vmatmul.mubr.bf16.vlgmr.msra.gmra.mrb[8].mxu0 %v491_v20 }
 0x3a5   :  { %1516 = vmatprep.mubr.msk.bf16.mxu0 %vm1693_vm0, %v1692_v0  ;;  %1501 = vmatpush3.bf16.msra.mxu0 %v1633_v23 }
 0x3a6   :  { %1502 = vmatprep.subr.bf16.mxu0 %v1692_v0 }
 0x3a9   :  { %1503 = vmatpush3.bf16.msra.mxu0 %v1634_v24 }
 0x3aa   :  { %1504 = vmatprep.subr.bf16.mxu0 %v1692_v0 }
 0x3ad   :  { %1505 = vmatpush3.bf16.msra.mxu0 %v1635_v25 }
 0x3ae   :  { %1506 = vmatprep.subr.bf16.mxu0 %v1692_v0 }
 0x3b1   :  { %1507 = vmatpush3.bf16.msra.mxu0 %v1636_v26  ;;  %v1663_v26 = vld [vmem:[#allocation2 + $0x270] sm:$0xff]  }
 0x3b2   :  { %1508 = vmatprep.subr.bf16.mxu0 %v1692_v0 }
 0x3b5   :  { %1509 = vmatpush3.bf16.msra.mxu0 %v1637_v27  ;;  %v1664_v27 = vld [vmem:[#allocation2 + $0x278] sm:$0xff]  }
 0x3b6   :  { %1510 = vmatprep.subr.bf16.mxu0 %v1692_v0 }
 0x3b9   :  { %1511 = vmatpush3.bf16.msra.mxu0 %v1638_v28  ;;  %v1271_v28 = vld [vmem:[%s1864_s2 + $0x8] ss:$0 sm:$0xff] }
 0x3ba   :  { %1512 = vmatprep.subr.bf16.mxu0 %v1692_v0 }
 0x3bd   :  { %1513 = vmatpush3.bf16.msra.mxu0 %v1639_v38 }
 0x3be   :  { %1514 = vmatprep.subr.bf16.mxu0 %v1692_v0 }
 0x3c1   :  { %1515 = vmatpush3.bf16.msra.mxu0 %v1640_v39 }
 0x3c2   :  { %1540 = vmatprep.subr.bf16.mxu0 %v1692_v0 }
 0x477   :  { %v599_v30 = vpop.f32.mrb[8].mxu0 }
 0x478   :  { %v600_v31 = vadd.f32 %v1231_v29, %v599_v30  ;;  %v1478_v32 = vpop.f32.mrb[9].mxu0 }
 0x479   :  { %v602_v33 = vpop.f32.mrb[10].mxu0 }
 0x47a   :  { %v605_v34 = vmul.f32 0.01, %v600_v31  ;;  %v1479_v35 = vpop.f32.mrb[11].mxu0 }
 0x47c   :  { %v606_v36 = vmax.f32 %v600_v31, %v605_v34 }
 0x47e   :  { %v607_v37 = vpack.c.bf16 %v606_v36, %v606_v36 }
 0x480   :  { %1497 = vmatmul.mubr.bf16.vlgmr.msra.gmra.mrb[8].mxu1 %v607_v37  ;;  %v1281_v37 = vld [vmem:[%s1864_s2 + $0x9] ss:$0 sm:$0xff] }
 0x481   :  { %1536 = vmatprep.mubr.msk.bf16.mxu1 %vm1693_vm0, %v1692_v0  ;;  %1521 = vmatpush3.bf16.msra.mxu1 %v1641_v40 }
 0x482   :  { %1522 = vmatprep.subr.bf16.mxu1 %v1692_v0 }
 0x485   :  { %1523 = vmatpush3.bf16.msra.mxu1 %v1642_v41 }
 0x486   :  { %1524 = vmatprep.subr.bf16.mxu1 %v1692_v0 }
 0x489   :  { %1525 = vmatpush3.bf16.msra.mxu1 %v1643_v42 }
 0x48a   :  { %1526 = vmatprep.subr.bf16.mxu1 %v1692_v0 }
 0x48d   :  { %1527 = vmatpush3.bf16.msra.mxu1 %v1644_v43 }
 0x48e   :  { %1528 = vmatprep.subr.bf16.mxu1 %v1692_v0 }
 0x491   :  { %1529 = vmatpush3.bf16.msra.mxu1 %v1645_v44 }
 0x492   :  { %1530 = vmatprep.subr.bf16.mxu1 %v1692_v0 }
 0x495   :  { %1531 = vmatpush3.bf16.msra.mxu1 %v1646_v45 }
 0x496   :  { %1532 = vmatprep.subr.bf16.mxu1 %v1692_v0 }
 0x499   :  { %1533 = vmatpush3.bf16.msra.mxu1 %v1647_v55 }
 0x49a   :  { %1534 = vmatprep.subr.bf16.mxu1 %v1692_v0 }
 0x49d   :  { %1535 = vmatpush3.bf16.msra.mxu1 %v1648_v56 }
 0x49e   :  { %1560 = vmatprep.subr.bf16.mxu1 %v1692_v0 }
 0x553   :  { %v715_v47 = vpop.f32.mrb[8].mxu1 }
 0x554   :  { %v716_v48 = vadd.f32 %v1241_v46, %v715_v47  ;;  %v1498_v49 = vpop.f32.mrb[9].mxu1 }
 0x555   :  { %v718_v50 = vpop.f32.mrb[10].mxu1 }
 0x556   :  { %v721_v51 = vmul.f32 0.01, %v716_v48  ;;  %v1499_v52 = vpop.f32.mrb[11].mxu1 }
 0x558   :  { %v722_v53 = vmax.f32 %v716_v48, %v721_v51 }
 0x55a   :  { %v723_v54 = vpack.c.bf16 %v722_v53, %v722_v53 }
 0x55c   :  { %1517 = vmatmul.mubr.bf16.vlgmr.msra.gmra.mrb[12].mxu0 %v723_v54 }
 0x55d   :  { %1556 = vmatprep.mubr.msk.bf16.mxu0 %vm1693_vm0, %v1692_v0  ;;  %1541 = vmatpush3.bf16.msra.mxu0 %v1649_v57 }
 0x55e   :  { %1542 = vmatprep.subr.bf16.mxu0 %v1692_v0 }
 0x561   :  { %1543 = vmatpush3.bf16.msra.mxu0 %v1650_v58 }
 0x562   :  { %1544 = vmatprep.subr.bf16.mxu0 %v1692_v0 }
 0x565   :  { %1545 = vmatpush3.bf16.msra.mxu0 %v1651_v59 }
 0x566   :  { %1546 = vmatprep.subr.bf16.mxu0 %v1692_v0 }
 0x569   :  { %1547 = vmatpush3.bf16.msra.mxu0 %v1652_v60 }
 0x56a   :  { %1548 = vmatprep.subr.bf16.mxu0 %v1692_v0 }
 0x56d   :  { %1549 = vmatpush3.bf16.msra.mxu0 %v1653_v61 }
 0x56e   :  { %1550 = vmatprep.subr.bf16.mxu0 %v1692_v0 }
 0x571   :  { %1551 = vmatpush3.bf16.msra.mxu0 %v1654_v62 }
 0x572   :  { %1552 = vmatprep.subr.bf16.mxu0 %v1692_v0 }
 0x575   :  { %1553 = vmatpush3.bf16.msra.mxu0 %v1655_v9 }
 0x576   :  { %1554 = vmatprep.subr.bf16.mxu0 %v1692_v0 }
 0x579   :  { %1555 = vmatpush3.bf16.msra.mxu0 %v1656_v10 }
 0x62f   :  { %v831_v1 = vpop.f32.mrb[12].mxu0 }
 0x630   :  { %v832_v2 = vadd.f32 %v1251_v63, %v831_v1  ;;  %v1518_v3 = vpop.f32.mrb[13].mxu0 }
 0x631   :  { %v834_v4 = vpop.f32.mrb[14].mxu0 }
 0x632   :  { %v837_v5 = vmul.f32 0.01, %v832_v2  ;;  %v1519_v6 = vpop.f32.mrb[15].mxu0 }
 0x634   :  { %v838_v7 = vmax.f32 %v832_v2, %v837_v5 }
 0x636   :  { %v839_v8 = vpack.c.bf16 %v838_v7, %v838_v7 }
 0x638   :  { %1537 = vmatmul.mubr.bf16.vlgmr.msra.gmra.mrb[12].mxu1 %v839_v8 }
 0x639   :  { %1576 = vmatprep.mubr.msk.bf16.mxu1 %vm1693_vm0, %v1692_v0  ;;  %1561 = vmatpush3.bf16.msra.mxu1 %v1657_v11 }
 0x63a   :  { %1562 = vmatprep.subr.bf16.mxu1 %v1692_v0 }
 0x63d   :  { %1563 = vmatpush3.bf16.msra.mxu1 %v1658_v12 }
 0x63e   :  { %1564 = vmatprep.subr.bf16.mxu1 %v1692_v0 }
 0x641   :  { %1565 = vmatpush3.bf16.msra.mxu1 %v1659_v13 }
 0x642   :  { %1566 = vmatprep.subr.bf16.mxu1 %v1692_v0 }
 0x645   :  { %1567 = vmatpush3.bf16.msra.mxu1 %v1660_v14 }
 0x646   :  { %1568 = vmatprep.subr.bf16.mxu1 %v1692_v0 }
 0x649   :  { %1569 = vmatpush3.bf16.msra.mxu1 %v1661_v15 }
 0x64a   :  { %1570 = vmatprep.subr.bf16.mxu1 %v1692_v0 }
 0x64d   :  { %1571 = vmatpush3.bf16.msra.mxu1 %v1662_v16 }
 0x64e   :  { %1572 = vmatprep.subr.bf16.mxu1 %v1692_v0 }
 0x651   :  { %1573 = vmatpush3.bf16.msra.mxu1 %v1663_v26 }
 0x652   :  { %1574 = vmatprep.subr.bf16.mxu1 %v1692_v0 }
 0x655   :  { %1575 = vmatpush3.bf16.msra.mxu1 %v1664_v27 }
 0x70b   :  { %v947_v18 = vpop.f32.mrb[12].mxu1 }
 0x70c   :  { %v948_v19 = vadd.f32 %v1261_v17, %v947_v18  ;;  %v1538_v20 = vpop.f32.mrb[13].mxu1 }
 0x70d   :  { %v950_v21 = vpop.f32.mrb[14].mxu1 }
 0x70e   :  { %v953_v22 = vmul.f32 0.01, %v948_v19  ;;  %v1539_v23 = vpop.f32.mrb[15].mxu1 }
 0x710   :  { %v954_v24 = vmax.f32 %v948_v19, %v953_v22 }
 0x712   :  { %v955_v25 = vpack.c.bf16 %v954_v24, %v954_v24 }
 0x714   :  { %1557 = vmatmul.mubr.bf16.vlgmr.msra.gmra.mrb[16].mxu0 %v955_v25 }
 0x7e7   :  { %v1063_v29 = vpop.f32.mrb[16].mxu0 }
 0x7e8   :  { %v1064_v30 = vadd.f32 %v1271_v28, %v1063_v29  ;;  %v1558_v31 = vpop.f32.mrb[17].mxu0 }
 0x7e9   :  { %v1066_v32 = vpop.f32.mrb[18].mxu0 }
 0x7ea   :  { %v1069_v33 = vmul.f32 0.01, %v1064_v30  ;;  %v1559_v34 = vpop.f32.mrb[19].mxu0 }
 0x7ec   :  { %v1070_v35 = vmax.f32 %v1064_v30, %v1069_v33 }
 0x7ee   :  { %v1071_v36 = vpack.c.bf16 %v1070_v35, %v1070_v35 }
 0x7f0   :  { %1577 = vmatmul.mubr.bf16.vlgmr.msra.gmra.mrb[16].mxu1 %v1071_v36 }
 0x8c3   :  { %v1179_v0 = vpop.f32.mrb[16].mxu1 }
 0x8c4   :  { %v1180_v38 = vadd.f32 %v1281_v37, %v1179_v0  ;;  %v1578_v39 = vpop.f32.mrb[17].mxu1 }
 0x8c5   :  { %v1182_v40 = vpop.f32.mrb[18].mxu1 }
 0x8c6   :  { %1185 = vst [vmem:[%s1865_s3] sm:$0xff] %v1180_v38  ;;  %v1579_v41 = vpop.f32.mrb[19].mxu1 }
 0x8c7   :  { %1190 = vsyncpa [#allocation3], 1 }

</bundles_post_ra>
